<compile_context>
chip_gen: v5e
topology: v5e:2x2
jax: 0.10.0
libtpu: 0.0.40
codegen_flags: <defaults>
</compile_context>

<pallas_src>
import functools
import math

import jax
import jax.numpy as jnp
from jax.experimental import pallas as pl
from jax.experimental.pallas import tpu as pltpu

_VMEM_LIMIT = 48 * 1024 * 1024  # fits v7x's 64 MiB VMEM with headroom
_LN_EPS = 1e-5


# ----------------------------------------------------------------------------
# Kernels
# ----------------------------------------------------------------------------

def _mha_sublayer_kernel(xq_ref, xkv_ref, wq_ref, bq_ref, wk_ref, bk_ref,
                         wv_ref, bv_ref, wo_ref, bo_ref, m_ref, g_ref, b_ref,
                         o_ref, acc_ref, *, scale, eps):
    """One (batch, head) grid step of the fused attention sublayer.

    Computes, entirely in VMEM:
        out = xq + LayerNorm( MHA(xq, xkv, xkv, mask) )
    The head axis (grid axis 1) is a reduction: per-head output-projection
    contributions accumulate into acc_ref; the last head applies bias, LN and
    the residual and writes the output block.
    """
    h = pl.program_id(1)

    @pl.when(h == 0)
    def _():
        acc_ref[...] = jnp.zeros_like(acc_ref)

    xq = xq_ref[0]                       # (Sq, D)
    xkv = xkv_ref[0]                     # (Sk, D)

    # Per-head projections (weights already sliced per head by the BlockSpec).
    q = jnp.dot(xq, wq_ref[0], preferred_element_type=jnp.float32) + bq_ref[0]
    k = jnp.dot(xkv, wk_ref[0], preferred_element_type=jnp.float32) + bk_ref[0]
    v = jnp.dot(xkv, wv_ref[0], preferred_element_type=jnp.float32) + bv_ref[0]

    s = jnp.dot(q, k.T, preferred_element_type=jnp.float32) * scale  # (Sq, Sk)
    mask = m_ref[0]                      # (Qm, Sk), Qm in {1, Sq}
    s = jnp.where(mask == 0, jnp.float32(-1e12), s)

    m = jnp.max(s, axis=-1, keepdims=True)
    e = jnp.exp(s - m)
    denom = jnp.sum(e, axis=-1, keepdims=True)
    p = e * pl.reciprocal(denom, approx=True)

    ctx = jnp.dot(p, v, preferred_element_type=jnp.float32)          # (Sq, dk)
    # Per-head slice of the output projection; sum over heads == linear_out.
    acc_ref[...] += jnp.dot(ctx, wo_ref[0], preferred_element_type=jnp.float32)

    @pl.when(h == pl.num_programs(1) - 1)
    def _():
        attn = acc_ref[...] + bo_ref[...]
        mean = jnp.mean(attn, axis=-1, keepdims=True)
        var = jnp.mean((attn - mean) ** 2, axis=-1, keepdims=True)
        norm = (attn - mean) * jax.lax.rsqrt(var + eps)
        o_ref[0] = (xq + norm * g_ref[...] + b_ref[...]).astype(o_ref.dtype)


def _ffn_sublayer_kernel(x_ref, w1_ref, b1_ref, w2_ref, b2_ref, g_ref, b_ref,
                         o_ref, *, eps):
    """out = x + LayerNorm( relu(x @ w1 + b1) @ w2 + b2 ) for one row tile."""
    x = x_ref[...]                                              # (tm, D)
    h = jnp.dot(x, w1_ref[...], preferred_element_type=jnp.float32) + b1_ref[...]
    h = jnp.maximum(h, 0.0)
    y = jnp.dot(h, w2_ref[...], preferred_element_type=jnp.float32) + b2_ref[...]
    mean = jnp.mean(y, axis=-1, keepdims=True)
    var = jnp.mean((y - mean) ** 2, axis=-1, keepdims=True)
    norm = (y - mean) * jax.lax.rsqrt(var + eps)
    o_ref[...] = (x + norm * g_ref[...] + b_ref[...]).astype(o_ref.dtype)


# ----------------------------------------------------------------------------
# Wrappers
# ----------------------------------------------------------------------------

def _pick_row_tile(m, cap=256):
    """Largest multiple-of-8 divisor of m that is <= cap (else the full m)."""
    if m <= cap:
        return m
    t = (cap // 8) * 8
    while t >= 8:
        if m % t == 0:
            return t
        t -= 8
    return m


def mha_sublayer(p, gamma, beta, xq, xkv, mask, num_heads, eps=_LN_EPS):
    """Fused: xq + LayerNorm(MultiheadAttention(xq, xkv, xkv, mask))."""
    B, Sq, D = xq.shape
    _, Sk, _ = xkv.shape
    H = num_heads
    d_k = D // H

    # Trace-time per-head weight views (tiny tensors; zero HBM activation cost).
    wq = p["wq"].reshape(D, H, d_k).transpose(1, 0, 2)   # (H, D, dk)
    wk = p["wk"].reshape(D, H, d_k).transpose(1, 0, 2)
    wv = p["wv"].reshape(D, H, d_k).transpose(1, 0, 2)
    bq = p["bq"].reshape(H, 1, d_k)
    bk = p["bk"].reshape(H, 1, d_k)
    bv = p["bv"].reshape(H, 1, d_k)
    wo = p["wo"].reshape(H, d_k, D)                      # (H, dk, D)
    bo = p["bo"].reshape(1, D)

    if mask.ndim == 4:                                   # (B, 1, Qm, Sk) -> (B, Qm, Sk)
        mask = mask[:, 0]
    mask = mask.astype(jnp.int32)
    Qm = mask.shape[1]

    gamma2 = gamma.reshape(1, D)
    beta2 = beta.reshape(1, D)

    flops = 2 * B * (Sq * D * D + 2 * Sk * D * D + 2 * Sq * Sk * D + Sq * D * D)
    bytes_accessed = 4 * (2 * B * Sq * D + B * Sk * D + 4 * D * D
                          + B * Qm * Sk + 2 * D)
    cost = pl.CostEstimate(flops=int(flops),
                           transcendentals=int(B * H * Sq * Sk),
                           bytes_accessed=int(bytes_accessed))

    kernel = functools.partial(_mha_sublayer_kernel,
                               scale=1.0 / math.sqrt(d_k), eps=eps)

    return pl.pallas_call(
        kernel,
        out_shape=jax.ShapeDtypeStruct((B, Sq, D), jnp.float32),
        grid=(B, H),
        in_specs=[
            pl.BlockSpec((1, Sq, D), lambda b, h: (b, 0, 0)),    # xq (residual)
            pl.BlockSpec((1, Sk, D), lambda b, h: (b, 0, 0)),    # xkv
            pl.BlockSpec((1, D, d_k), lambda b, h: (h, 0, 0)),   # wq head slice
            pl.BlockSpec((1, 1, d_k), lambda b, h: (h, 0, 0)),   # bq head slice
            pl.BlockSpec((1, D, d_k), lambda b, h: (h, 0, 0)),   # wk
            pl.BlockSpec((1, 1, d_k), lambda b, h: (h, 0, 0)),   # bk
            pl.BlockSpec((1, D, d_k), lambda b, h: (h, 0, 0)),   # wv
            pl.BlockSpec((1, 1, d_k), lambda b, h: (h, 0, 0)),   # bv
            pl.BlockSpec((1, d_k, D), lambda b, h: (h, 0, 0)),   # wo head slice
            pl.BlockSpec((1, D), lambda b, h: (0, 0)),           # bo
            pl.BlockSpec((1, Qm, Sk), lambda b, h: (b, 0, 0)),   # mask (shared over heads)
            pl.BlockSpec((1, D), lambda b, h: (0, 0)),           # LN gamma
            pl.BlockSpec((1, D), lambda b, h: (0, 0)),           # LN beta
        ],
        out_specs=pl.BlockSpec((1, Sq, D), lambda b, h: (b, 0, 0)),
        scratch_shapes=[pltpu.VMEM((Sq, D), jnp.float32)],
        compiler_params=pltpu.CompilerParams(
            dimension_semantics=("parallel", "arbitrary"),
            vmem_limit_bytes=_VMEM_LIMIT),
        cost_estimate=cost,
    )(xq, xkv, wq, bq, wk, bk, wv, bv, wo, bo, mask, gamma2, beta2)


def ffn_sublayer(w1, b1, w2, b2, gamma, beta, x, eps=_LN_EPS):
    """Fused: x + LayerNorm(linear2(relu(linear1(x))))."""
    B, S, D = x.shape
    Dff = w1.shape[1]
    M = B * S
    tm = _pick_row_tile(M)

    x2 = x.reshape(M, D)
    b1_2 = b1.reshape(1, Dff)
    b2_2 = b2.reshape(1, D)
    g2 = gamma.reshape(1, D)
    bb2 = beta.reshape(1, D)

    cost = pl.CostEstimate(
        flops=int(4 * M * D * Dff),
        transcendentals=0,
        bytes_accessed=int(4 * (2 * M * D + 2 * D * Dff + Dff + 3 * D)))

    out = pl.pallas_call(
        functools.partial(_ffn_sublayer_kernel, eps=eps),
        out_shape=jax.ShapeDtypeStruct((M, D), jnp.float32),
        grid=(M // tm,),
        in_specs=[
            pl.BlockSpec((tm, D), lambda i: (i, 0)),
            pl.BlockSpec((D, Dff), lambda i: (0, 0)),
            pl.BlockSpec((1, Dff), lambda i: (0, 0)),
            pl.BlockSpec((Dff, D), lambda i: (0, 0)),
            pl.BlockSpec((1, D), lambda i: (0, 0)),
            pl.BlockSpec((1, D), lambda i: (0, 0)),
            pl.BlockSpec((1, D), lambda i: (0, 0)),
        ],
        out_specs=pl.BlockSpec((tm, D), lambda i: (i, 0)),
        compiler_params=pltpu.CompilerParams(
            dimension_semantics=("parallel",),
            vmem_limit_bytes=_VMEM_LIMIT),
        cost_estimate=cost,
    )(x2, w1, b1_2, w2, b2_2, g2, bb2)
    return out.reshape(B, S, D)


def decoder_layer_forward(params, x, memory, src_mask, tgt_mask, num_heads):
    """Matches DecoderLayer.forward (3D inputs, dropout in eval mode)."""
    x = mha_sublayer(params["self_attn"], params["norm1_g"], params["norm1_b"],
                     x, x, tgt_mask, num_heads)
    x = mha_sublayer(params["enc_attn"], params["norm2_g"], params["norm2_b"],
                     x, memory, src_mask, num_heads)
    x = ffn_sublayer(params["w1"], params["b1"], params["w2"], params["b2"],
                     params["norm3_g"], params["norm3_b"], x)
    return x


# ----------------------------------------------------------------------------
# Pure-JAX reference (for a correctness assert) and parameter init
# ----------------------------------------------------------------------------

def _layernorm_ref(y, g, b, eps=_LN_EPS):
    mean = y.mean(-1, keepdims=True)
    var = ((y - mean) ** 2).mean(-1, keepdims=True)
    return (y - mean) / jnp.sqrt(var + eps) * g + b


def _mha_ref(p, q_in, kv_in, mask, num_heads):
    B, Sq, D = q_in.shape
    Sk = kv_in.shape[1]
    dk = D // num_heads
    q = (q_in @ p["wq"] + p["bq"]).reshape(B, Sq, num_heads, dk).transpose(0, 2, 1, 3)
    k = (kv_in @ p["wk"] + p["bk"]).reshape(B, Sk, num_heads, dk).transpose(0, 2, 1, 3)
    v = (kv_in @ p["wv"] + p["bv"]).reshape(B, Sk, num_heads, dk).transpose(0, 2, 1, 3)
    s = jnp.einsum("bhqd,bhkd->bhqk", q, k) / math.sqrt(dk)
    s = jnp.where(mask == 0, -1e12, s)
    a = jax.nn.softmax(s, axis=-1)
    ctx = jnp.einsum("bhqk,bhkd->bhqd", a, v)
    ctx = ctx.transpose(0, 2, 1, 3).reshape(B, Sq, D)
    return ctx @ p["wo"] + p["bo"]


def decoder_layer_ref(params, x, memory, src_mask, tgt_mask, num_heads):
    a = _mha_ref(params["self_attn"], x, x, tgt_mask, num_heads)
    x = x + _layernorm_ref(a, params["norm1_g"], params["norm1_b"])
    a = _mha_ref(params["enc_attn"], x, memory, src_mask, num_heads)
    x = x + _layernorm_ref(a, params["norm2_g"], params["norm2_b"])
    h = jnp.maximum(x @ params["w1"] + params["b1"], 0.0)
    y = h @ params["w2"] + params["b2"]
    x = x + _layernorm_ref(y, params["norm3_g"], params["norm3_b"])
    return x


def init_decoder_layer_params(key, d_model, d_ff):
    keys = iter(jax.random.split(key, 64))

    def dense(i, o):
        w = jax.random.normal(next(keys), (i, o), jnp.float32) / math.sqrt(i)
        b = jax.random.normal(next(keys), (o,), jnp.float32) * 0.01
        return w, b

    def mha():
        p = {}
        for nm in ("q", "k", "v", "o"):
            w, b = dense(d_model, d_model)
            p["w" + nm], p["b" + nm] = w, b
        return p

    w1, b1 = dense(d_model, d_ff)
    w2, b2 = dense(d_ff, d_model)
    return dict(
        self_attn=mha(), enc_attn=mha(),
        w1=w1, b1=b1, w2=w2, b2=b2,
        norm1_g=jnp.ones(d_model), norm1_b=jnp.zeros(d_model),
        norm2_g=jnp.ones(d_model), norm2_b=jnp.zeros(d_model),
        norm3_g=jnp.ones(d_model), norm3_b=jnp.zeros(d_model),
    )


# ----------------------------------------------------------------------------
# Demo
# ----------------------------------------------------------------------------

if __name__ == "__main__":
    D, H, Dff = 32, 4, 64
    B, S_tgt, S_src = 2, 8, 12

    root = jax.random.PRNGKey(0)
    k_params, k_x, k_mem = jax.random.split(root, 3)
    params = init_decoder_layer_params(k_params, D, Dff)

    x = jax.random.normal(k_x, (B, S_tgt, D), jnp.float32)
    memory = jax.random.normal(k_mem, (B, S_src, D), jnp.float32)

    # Typical decoder masks: pad+causal target mask, pad source mask.
    tgt_lens = jnp.array([8, 6], jnp.int32)
    src_lens = jnp.array([12, 9], jnp.int32)
    tgt_pad = jnp.arange(S_tgt)[None, :] < tgt_lens[:, None]          # (B, St)
    causal = jnp.tril(jnp.ones((S_tgt, S_tgt), bool))
    tgt_mask = (tgt_pad[:, None, :, None] & causal[None, None]).astype(jnp.int32)  # (B,1,St,St)
    src_mask = (jnp.arange(S_src)[None, :] < src_lens[:, None]
                )[:, None, None, :].astype(jnp.int32)                  # (B,1,1,Ss)

    out = decoder_layer_forward(params, x, memory, src_mask, tgt_mask, H)
    out = jax.block_until_ready(out)

    ref = decoder_layer_ref(params, x, memory, src_mask, tgt_mask, H)
    assert out.shape == (B, S_tgt, D)
    assert bool(jnp.all(jnp.isfinite(out)))
    max_err = float(jnp.max(jnp.abs(out - ref)))
    assert max_err < 5e-2, f"mismatch vs pure-JAX reference: {max_err}"
    print("KERNEL_OK")
</pallas_src>

<mosaic_0001>
module attributes {stable_mosaic.version = 11 : i64} {
  func.func @_mha_sublayer_kernel(%arg0: i32, %arg1: i32, %arg2: memref<1x8x32xf32, #tpu.memory_space<vmem>>, %arg3: memref<1x8x32xf32, #tpu.memory_space<vmem>>, %arg4: memref<1x32x8xf32, #tpu.memory_space<vmem>>, %arg5: memref<1x1x8xf32, #tpu.memory_space<vmem>>, %arg6: memref<1x32x8xf32, #tpu.memory_space<vmem>>, %arg7: memref<1x1x8xf32, #tpu.memory_space<vmem>>, %arg8: memref<1x32x8xf32, #tpu.memory_space<vmem>>, %arg9: memref<1x1x8xf32, #tpu.memory_space<vmem>>, %arg10: memref<1x8x32xf32, #tpu.memory_space<vmem>>, %arg11: memref<1x32xf32, #tpu.memory_space<vmem>>, %arg12: memref<1x8x8xi32, #tpu.memory_space<vmem>>, %arg13: memref<1x32xf32, #tpu.memory_space<vmem>>, %arg14: memref<1x32xf32, #tpu.memory_space<vmem>>, %arg15: memref<1x8x32xf32, #tpu.memory_space<vmem>>, %arg16: memref<8x32xf32, #tpu.memory_space<vmem>>) attributes {dimension_semantics = [#tpu.dimension_semantics<parallel>, #tpu.dimension_semantics<arbitrary>], iteration_bounds = array<i64: 2, 4>, scalar_prefetch = 0 : i64, scratch_operands = 1 : i64, tpu.core_type = #tpu.core_type<tc>, window_params = [{transform_indices = @transform_0, window_bounds = array<i64: 1, 8, 32>}, {transform_indices = @transform_1, window_bounds = array<i64: 1, 8, 32>}, {transform_indices = @transform_2, window_bounds = array<i64: 1, 32, 8>}, {transform_indices = @transform_3, window_bounds = array<i64: 1, 1, 8>}, {transform_indices = @transform_4, window_bounds = array<i64: 1, 32, 8>}, {transform_indices = @transform_5, window_bounds = array<i64: 1, 1, 8>}, {transform_indices = @transform_6, window_bounds = array<i64: 1, 32, 8>}, {transform_indices = @transform_7, window_bounds = array<i64: 1, 1, 8>}, {transform_indices = @transform_8, window_bounds = array<i64: 1, 8, 32>}, {pipeline_mode = #tpu.pipeline_mode<synchronous>, transform_indices = @transform_9, window_bounds = array<i64: 1, 32>}, {transform_indices = @transform_10, window_bounds = array<i64: 1, 8, 8>}, {pipeline_mode = #tpu.pipeline_mode<synchronous>, transform_indices = @transform_11, window_bounds = array<i64: 1, 32>}, {pipeline_mode = #tpu.pipeline_mode<synchronous>, transform_indices = @transform_12, window_bounds = array<i64: 1, 32>}, {transform_indices = @transform_13, window_bounds = array<i64: 1, 8, 32>}]} {
    %c0_i32 = arith.constant 0 : i32
    %0 = arith.cmpi eq, %arg1, %c0_i32 : i32
    %1 = arith.extui %0 : i1 to i32
    %c0_i32_0 = arith.constant 0 : i32
    %2 = arith.cmpi ne, %1, %c0_i32_0 : i32
    scf.if %2 {
      %cst_45 = arith.constant 0.000000e+00 : f32
      %58 = vector.broadcast %cst_45 : f32 to vector<8x32xf32>
      %c0_46 = arith.constant 0 : index
      %c0_47 = arith.constant 0 : index
      %59 = vector.load %arg16[%c0_46, %c0_47] : memref<8x32xf32, #tpu.memory_space<vmem>>, vector<8x32xf32>
      tpu.vector_store %arg16[%c0_46, %c0_47], %58 {strides = array<i32>} : memref<8x32xf32, #tpu.memory_space<vmem>>, vector<8x32xf32>,
    } else {
    }
    %c0 = arith.constant 0 : index
    %c0_1 = arith.constant 0 : index
    %c0_2 = arith.constant 0 : index
    %3 = vector.load %arg2[%c0, %c0_1, %c0_2] : memref<1x8x32xf32, #tpu.memory_space<vmem>>, vector<1x8x32xf32>
    %4 = vector.shape_cast %3 : vector<1x8x32xf32> to vector<8x32xf32>
    %c0_3 = arith.constant 0 : index
    %c0_4 = arith.constant 0 : index
    %c0_5 = arith.constant 0 : index
    %5 = vector.load %arg3[%c0_3, %c0_4, %c0_5] : memref<1x8x32xf32, #tpu.memory_space<vmem>>, vector<1x8x32xf32>
    %6 = vector.shape_cast %5 : vector<1x8x32xf32> to vector<8x32xf32>
    %c0_6 = arith.constant 0 : index
    %c0_7 = arith.constant 0 : index
    %c0_8 = arith.constant 0 : index
    %7 = vector.load %arg4[%c0_6, %c0_7, %c0_8] : memref<1x32x8xf32, #tpu.memory_space<vmem>>, vector<1x32x8xf32>
    %8 = vector.shape_cast %7 : vector<1x32x8xf32> to vector<32x8xf32>
    %cst = arith.constant dense<0.000000e+00> : vector<8x8xf32>
    %9 = tpu.matmul %4, %8, %cst {dimension_numbers = #tpu.dot_dimension_numbers<[1], [0], [0], [1], [0, 0, 1, 1], [], []>} : vector<8x32xf32>, vector<32x8xf32>, vector<8x8xf32> -> vector<8x8xf32>
    %c0_9 = arith.constant 0 : index
    %c0_10 = arith.constant 0 : index
    %c0_11 = arith.constant 0 : index
    %10 = vector.load %arg5[%c0_9, %c0_10, %c0_11] : memref<1x1x8xf32, #tpu.memory_space<vmem>>, vector<1x1x8xf32>
    %11 = vector.shape_cast %10 : vector<1x1x8xf32> to vector<1x8xf32>
    %12 = vector.broadcast %11 : vector<1x8xf32> to vector<8x8xf32>
    %13 = arith.addf %9, %12 : vector<8x8xf32>
    %c0_12 = arith.constant 0 : index
    %c0_13 = arith.constant 0 : index
    %c0_14 = arith.constant 0 : index
    %14 = vector.load %arg6[%c0_12, %c0_13, %c0_14] : memref<1x32x8xf32, #tpu.memory_space<vmem>>, vector<1x32x8xf32>
    %15 = vector.shape_cast %14 : vector<1x32x8xf32> to vector<32x8xf32>
    %cst_15 = arith.constant dense<0.000000e+00> : vector<8x8xf32>
    %16 = tpu.matmul %6, %15, %cst_15 {dimension_numbers = #tpu.dot_dimension_numbers<[1], [0], [0], [1], [0, 0, 1, 1], [], []>} : vector<8x32xf32>, vector<32x8xf32>, vector<8x8xf32> -> vector<8x8xf32>
    %c0_16 = arith.constant 0 : index
    %c0_17 = arith.constant 0 : index
    %c0_18 = arith.constant 0 : index
    %17 = vector.load %arg7[%c0_16, %c0_17, %c0_18] : memref<1x1x8xf32, #tpu.memory_space<vmem>>, vector<1x1x8xf32>
    %18 = vector.shape_cast %17 : vector<1x1x8xf32> to vector<1x8xf32>
    %19 = vector.broadcast %18 : vector<1x8xf32> to vector<8x8xf32>
    %20 = arith.addf %16, %19 : vector<8x8xf32>
    %c0_19 = arith.constant 0 : index
    %c0_20 = arith.constant 0 : index
    %c0_21 = arith.constant 0 : index
    %21 = vector.load %arg8[%c0_19, %c0_20, %c0_21] : memref<1x32x8xf32, #tpu.memory_space<vmem>>, vector<1x32x8xf32>
    %22 = vector.shape_cast %21 : vector<1x32x8xf32> to vector<32x8xf32>
    %cst_22 = arith.constant dense<0.000000e+00> : vector<8x8xf32>
    %23 = tpu.matmul %6, %22, %cst_22 {dimension_numbers = #tpu.dot_dimension_numbers<[1], [0], [0], [1], [0, 0, 1, 1], [], []>} : vector<8x32xf32>, vector<32x8xf32>, vector<8x8xf32> -> vector<8x8xf32>
    %c0_23 = arith.constant 0 : index
    %c0_24 = arith.constant 0 : index
    %c0_25 = arith.constant 0 : index
    %24 = vector.load %arg9[%c0_23, %c0_24, %c0_25] : memref<1x1x8xf32, #tpu.memory_space<vmem>>, vector<1x1x8xf32>
    %25 = vector.shape_cast %24 : vector<1x1x8xf32> to vector<1x8xf32>
    %26 = vector.broadcast %25 : vector<1x8xf32> to vector<8x8xf32>
    %27 = arith.addf %23, %26 : vector<8x8xf32>
    %28 = tpu.transpose %20, [1, 0] : vector<8x8xf32> -> vector<8x8xf32>
    %cst_26 = arith.constant dense<0.000000e+00> : vector<8x8xf32>
    %29 = tpu.matmul %13, %28, %cst_26 {dimension_numbers = #tpu.dot_dimension_numbers<[1], [0], [0], [1], [0, 0, 1, 1], [], []>} : vector<8x8xf32>, vector<8x8xf32>, vector<8x8xf32> -> vector<8x8xf32>
    %cst_27 = arith.constant 0.353553385 : f32
    %30 = vector.broadcast %cst_27 : f32 to vector<8x8xf32>
    %31 = arith.mulf %29, %30 : vector<8x8xf32>
    %c0_28 = arith.constant 0 : index
    %c0_29 = arith.constant 0 : index
    %c0_30 = arith.constant 0 : index
    %32 = vector.load %arg12[%c0_28, %c0_29, %c0_30] : memref<1x8x8xi32, #tpu.memory_space<vmem>>, vector<1x8x8xi32>
    %33 = vector.shape_cast %32 : vector<1x8x8xi32> to vector<8x8xi32>
    %c0_i32_31 = arith.constant 0 : i32
    %34 = vector.broadcast %c0_i32_31 : i32 to vector<8x8xi32>
    %35 = arith.cmpi eq, %33, %34 : vector<8x8xi32>
    %cst_32 = arith.constant -9.99999995E+11 : f32
    %36 = vector.broadcast %cst_32 : f32 to vector<8x8xf32>
    %37 = arith.select %35, %36, %31 : vector<8x8xi1>, vector<8x8xf32>
    %cst_33 = arith.constant dense<0xFF800000> : vector<8xf32>
    %38 = vector.multi_reduction <maximumf>, %37, %cst_33 [1] : vector<8x8xf32> to vector<8xf32>
    %39 = vector.shape_cast %38 : vector<8xf32> to vector<8x1xf32>
    %40 = vector.broadcast %39 : vector<8x1xf32> to vector<8x8xf32>
    %41 = arith.subf %37, %40 : vector<8x8xf32>
    %42 = math.exp %41 : vector<8x8xf32>
    %cst_34 = arith.constant dense<0.000000e+00> : vector<8xf32>
    %43 = vector.multi_reduction <add>, %42, %cst_34 [1] : vector<8x8xf32> to vector<8xf32>
    %44 = vector.shape_cast %43 : vector<8xf32> to vector<8x1xf32>
    %45 = tpu.reciprocal %44 {approx = true} : vector<8x1xf32> -> vector<8x1xf32>
    %46 = vector.broadcast %45 : vector<8x1xf32> to vector<8x8xf32>
    %47 = arith.mulf %42, %46 : vector<8x8xf32>
    %cst_35 = arith.constant dense<0.000000e+00> : vector<8x8xf32>
    %48 = tpu.matmul %47, %27, %cst_35 {dimension_numbers = #tpu.dot_dimension_numbers<[1], [0], [0], [1], [0, 0, 1, 1], [], []>} : vector<8x8xf32>, vector<8x8xf32>, vector<8x8xf32> -> vector<8x8xf32>
    %c0_36 = arith.constant 0 : index
    %c0_37 = arith.constant 0 : index
    %49 = vector.load %arg16[%c0_36, %c0_37] : memref<8x32xf32, #tpu.memory_space<vmem>>, vector<8x32xf32>
    %c0_38 = arith.constant 0 : index
    %c0_39 = arith.constant 0 : index
    %c0_40 = arith.constant 0 : index
    %50 = vector.load %arg10[%c0_38, %c0_39, %c0_40] : memref<1x8x32xf32, #tpu.memory_space<vmem>>, vector<1x8x32xf32>
    %51 = vector.shape_cast %50 : vector<1x8x32xf32> to vector<8x32xf32>
    %cst_41 = arith.constant dense<0.000000e+00> : vector<8x32xf32>
    %52 = tpu.matmul %48, %51, %cst_41 {dimension_numbers = #tpu.dot_dimension_numbers<[1], [0], [0], [1], [0, 0, 1, 1], [], []>} : vector<8x8xf32>, vector<8x32xf32>, vector<8x32xf32> -> vector<8x32xf32>
    %53 = arith.addf %49, %52 : vector<8x32xf32>
    %c0_42 = arith.constant 0 : index
    %c0_43 = arith.constant 0 : index
    %54 = vector.load %arg16[%c0_42, %c0_43] : memref<8x32xf32, #tpu.memory_space<vmem>>, vector<8x32xf32>
    tpu.vector_store %arg16[%c0_42, %c0_43], %53 {strides = array<i32>} : memref<8x32xf32, #tpu.memory_space<vmem>>, vector<8x32xf32>,
    %c3_i32 = arith.constant 3 : i32
    %55 = arith.cmpi eq, %arg1, %c3_i32 : i32
    %56 = arith.extui %55 : i1 to i32
    %c0_i32_44 = arith.constant 0 : i32
    %57 = arith.cmpi ne, %56, %c0_i32_44 : i32
    scf.if %57 {
      %c0_45 = arith.constant 0 : index
      %c0_46 = arith.constant 0 : index
      %58 = vector.load %arg16[%c0_45, %c0_46] : memref<8x32xf32, #tpu.memory_space<vmem>>, vector<8x32xf32>
      %c0_47 = arith.constant 0 : index
      %c0_48 = arith.constant 0 : index
      %59 = vector.load %arg11[%c0_47, %c0_48] : memref<1x32xf32, #tpu.memory_space<vmem>>, vector<1x32xf32>
      %60 = vector.broadcast %59 : vector<1x32xf32> to vector<8x32xf32>
      %61 = arith.addf %58, %60 : vector<8x32xf32>
      %cst_49 = arith.constant dense<0.000000e+00> : vector<8xf32>
      %62 = vector.multi_reduction <add>, %61, %cst_49 [1] : vector<8x32xf32> to vector<8xf32>
      %63 = vector.shape_cast %62 : vector<8xf32> to vector<8x1xf32>
      %cst_50 = arith.constant 3.200000e+01 : f32
      %64 = vector.broadcast %cst_50 : f32 to vector<8x1xf32>
      %65 = arith.divf %63, %64 : vector<8x1xf32>
      %66 = vector.broadcast %65 : vector<8x1xf32> to vector<8x32xf32>
      %67 = arith.subf %61, %66 : vector<8x32xf32>
      %68 = arith.mulf %67, %67 : vector<8x32xf32>
      %cst_51 = arith.constant dense<0.000000e+00> : vector<8xf32>
      %69 = vector.multi_reduction <add>, %68, %cst_51 [1] : vector<8x32xf32> to vector<8xf32>
      %70 = vector.shape_cast %69 : vector<8xf32> to vector<8x1xf32>
      %cst_52 = arith.constant 3.200000e+01 : f32
      %71 = vector.broadcast %cst_52 : f32 to vector<8x1xf32>
      %72 = arith.divf %70, %71 : vector<8x1xf32>
      %73 = vector.broadcast %65 : vector<8x1xf32> to vector<8x32xf32>
      %74 = arith.subf %61, %73 : vector<8x32xf32>
      %cst_53 = arith.constant 9.99999974E-6 : f32
      %75 = vector.broadcast %cst_53 : f32 to vector<8x1xf32>
      %76 = arith.addf %72, %75 : vector<8x1xf32>
      %77 = math.rsqrt %76 : vector<8x1xf32>
      %78 = vector.broadcast %77 : vector<8x1xf32> to vector<8x32xf32>
      %79 = arith.mulf %74, %78 : vector<8x32xf32>
      %c0_54 = arith.constant 0 : index
      %c0_55 = arith.constant 0 : index
      %80 = vector.load %arg13[%c0_54, %c0_55] : memref<1x32xf32, #tpu.memory_space<vmem>>, vector<1x32xf32>
      %81 = vector.broadcast %80 : vector<1x32xf32> to vector<8x32xf32>
      %82 = arith.mulf %79, %81 : vector<8x32xf32>
      %83 = arith.addf %4, %82 : vector<8x32xf32>
      %c0_56 = arith.constant 0 : index
      %c0_57 = arith.constant 0 : index
      %84 = vector.load %arg14[%c0_56, %c0_57] : memref<1x32xf32, #tpu.memory_space<vmem>>, vector<1x32xf32>
      %85 = vector.broadcast %84 : vector<1x32xf32> to vector<8x32xf32>
      %86 = arith.addf %83, %85 : vector<8x32xf32>
      %c0_58 = arith.constant 0 : index
      %c0_59 = arith.constant 0 : index
      %c0_60 = arith.constant 0 : index
      %87 = vector.load %arg15[%c0_58, %c0_59, %c0_60] : memref<1x8x32xf32, #tpu.memory_space<vmem>>, vector<1x8x32xf32>
      %88 = vector.shape_cast %87 : vector<1x8x32xf32> to vector<8x32xf32>
      %89 = vector.shape_cast %86 : vector<8x32xf32> to vector<1x8x32xf32>
      tpu.vector_store %arg15[%c0_58, %c0_59, %c0_60], %89 {strides = array<i32>} : memref<1x8x32xf32, #tpu.memory_space<vmem>>, vector<1x8x32xf32>,
    } else {
    }
    return
  }
  func.func @transform_0(%arg0: i32, %arg1: i32) -> (i32, i32, i32) {
    %c0_i32 = arith.constant 0 : i32
    %c0_i32_0 = arith.constant 0 : i32
    %c0_i32_1 = arith.constant 0 : i32
    return %arg0, %c0_i32, %c0_i32_0 : i32, i32, i32
  }
  func.func @transform_1(%arg0: i32, %arg1: i32) -> (i32, i32, i32) {
    %c0_i32 = arith.constant 0 : i32
    %c0_i32_0 = arith.constant 0 : i32
    %c0_i32_1 = arith.constant 0 : i32
    return %arg0, %c0_i32, %c0_i32_0 : i32, i32, i32
  }
  func.func @transform_2(%arg0: i32, %arg1: i32) -> (i32, i32, i32) {
    %c0_i32 = arith.constant 0 : i32
    %c0_i32_0 = arith.constant 0 : i32
    %c0_i32_1 = arith.constant 0 : i32
    return %arg1, %c0_i32, %c0_i32_0 : i32, i32, i32
  }
  func.func @transform_3(%arg0: i32, %arg1: i32) -> (i32, i32, i32) {
    %c0_i32 = arith.constant 0 : i32
    %c0_i32_0 = arith.constant 0 : i32
    %c0_i32_1 = arith.constant 0 : i32
    return %arg1, %c0_i32, %c0_i32_0 : i32, i32, i32
  }
  func.func @transform_4(%arg0: i32, %arg1: i32) -> (i32, i32, i32) {
    %c0_i32 = arith.constant 0 : i32
    %c0_i32_0 = arith.constant 0 : i32
    %c0_i32_1 = arith.constant 0 : i32
    return %arg1, %c0_i32, %c0_i32_0 : i32, i32, i32
  }
  func.func @transform_5(%arg0: i32, %arg1: i32) -> (i32, i32, i32) {
    %c0_i32 = arith.constant 0 : i32
    %c0_i32_0 = arith.constant 0 : i32
    %c0_i32_1 = arith.constant 0 : i32
    return %arg1, %c0_i32, %c0_i32_0 : i32, i32, i32
  }
  func.func @transform_6(%arg0: i32, %arg1: i32) -> (i32, i32, i32) {
    %c0_i32 = arith.constant 0 : i32
    %c0_i32_0 = arith.constant 0 : i32
    %c0_i32_1 = arith.constant 0 : i32
    return %arg1, %c0_i32, %c0_i32_0 : i32, i32, i32
  }
  func.func @transform_7(%arg0: i32, %arg1: i32) -> (i32, i32, i32) {
    %c0_i32 = arith.constant 0 : i32
    %c0_i32_0 = arith.constant 0 : i32
    %c0_i32_1 = arith.constant 0 : i32
    return %arg1, %c0_i32, %c0_i32_0 : i32, i32, i32
  }
  func.func @transform_8(%arg0: i32, %arg1: i32) -> (i32, i32, i32) {
    %c0_i32 = arith.constant 0 : i32
    %c0_i32_0 = arith.constant 0 : i32
    %c0_i32_1 = arith.constant 0 : i32
    return %arg1, %c0_i32, %c0_i32_0 : i32, i32, i32
  }
  func.func @transform_9(%arg0: i32, %arg1: i32) -> (i32, i32) {
    %c0_i32 = arith.constant 0 : i32
    %c0_i32_0 = arith.constant 0 : i32
    %c0_i32_1 = arith.constant 0 : i32
    return %c0_i32, %c0_i32_0 : i32, i32
  }
  func.func @transform_10(%arg0: i32, %arg1: i32) -> (i32, i32, i32) {
    %c0_i32 = arith.constant 0 : i32
    %c0_i32_0 = arith.constant 0 : i32
    %c0_i32_1 = arith.constant 0 : i32
    return %arg0, %c0_i32, %c0_i32_0 : i32, i32, i32
  }
  func.func @transform_11(%arg0: i32, %arg1: i32) -> (i32, i32) {
    %c0_i32 = arith.constant 0 : i32
    %c0_i32_0 = arith.constant 0 : i32
    %c0_i32_1 = arith.constant 0 : i32
    return %c0_i32, %c0_i32_0 : i32, i32
  }
  func.func @transform_12(%arg0: i32, %arg1: i32) -> (i32, i32) {
    %c0_i32 = arith.constant 0 : i32
    %c0_i32_0 = arith.constant 0 : i32
    %c0_i32_1 = arith.constant 0 : i32
    return %c0_i32, %c0_i32_0 : i32, i32
  }
  func.func @transform_13(%arg0: i32, %arg1: i32) -> (i32, i32, i32) {
    %c0_i32 = arith.constant 0 : i32
    %c0_i32_0 = arith.constant 0 : i32
    %c0_i32_1 = arith.constant 0 : i32
    return %arg0, %c0_i32, %c0_i32_0 : i32, i32, i32
  }
}

</mosaic_0001>

<bundles_post_ra>
// kernel: tpu_custom_call.1
= control target key start
LH: loop header
LB: loop body
LE: loop exit
PB: predicated region body
PF: predicated region fallthrough
CT: control target
= control target key end

     0   :  { %s1551_s0 = inlined_call_operand.vmem [shape: f32[2,8,32], index: 0, kind: input, shape index: {}]   ;;  %s1552_s1 = inlined_call_operand.vmem [shape: f32[2,8,32], index: 1, kind: input, shape index: {}]   ;;  %s1553_s2 = inlined_call_operand.vmem [shape: f32[4,32,8], index: 2, kind: input, shape index: {}]   ;;  %s1554_s3 = inlined_call_operand.vmem [shape: f32[4,1,8], index: 3, kind: input, shape index: {}]   ;;  %s1555_s4 = inlined_call_operand.vmem [shape: f32[4,32,8], index: 4, kind: input, shape index: {}]   ;;  %s1556_s5 = inlined_call_operand.vmem [shape: f32[4,1,8], index: 5, kind: input, shape index: {}]   ;;  %s1557_s6 = inlined_call_operand.vmem [shape: f32[4,32,8], index: 6, kind: input, shape index: {}]   ;;  %s1558_s7 = inlined_call_operand.vmem [shape: f32[4,1,8], index: 7, kind: input, shape index: {}]   ;;  %s1559_s8 = inlined_call_operand.vmem [shape: f32[4,8,32], index: 8, kind: input, shape index: {}]   ;;  %s1560_s9 = inlined_call_operand.vmem [shape: f32[1,32], index: 9, kind: input, shape index: {}]   ;;  %s1561_s10 = inlined_call_operand.vmem [shape: s32[2,8,8], index: 10, kind: input, shape index: {}]   ;;  %s1562_s11 = inlined_call_operand.vmem [shape: f32[1,32], index: 11, kind: input, shape index: {}]   ;;  %s1563_s12 = inlined_call_operand.vmem [shape: f32[1,32], index: 12, kind: input, shape index: {}]   ;;  %s1564_s13 = inlined_call_operand.hbm [shape: f32[2,8,32], index: 13, kind: output, shape index: {}]  }
   0x1   :  { %1579 = sst [smem:[#allocation18_spill]] %s1553_s2 }
   0x2   :  { %1580 = sst [smem:[#allocation19_spill]] %s1560_s9 }
   0x3   :  { %1581 = sst [smem:[#allocation20_spill]] %s1562_s11 }
   0x4   :  { %1582 = sst [smem:[#allocation21_spill]] %s1563_s12 }
   0x5   :  { %1583 = sst [smem:[#allocation22_spill]] %s1564_s13 }
   0x6   :  { %18 = vsyncpa [#allocation4], 0 }
   0x7   :  { %20 = vsyncpa [#allocation4 + $0x1], 0  ;;  %s1315_s25 = smov 0   ;;  %s1317_s26 = smov 0  }
   0x8   :  { %s1319_s27 = smov 0   ;;  %s1321_s28 = smov 0  }
   0x9   :  { %s1323_s29 = smov 0   ;;  %s1325_s30 = smov 0  }
   0xa   :  { %s1327_s14 = smov 0   ;;  %s1329_s15 = smov 0  }
   0xb LB: > { %1584 = sst [smem:[#allocation6_spill]] %s1213_s25  ;;  %s1028_s16 = sadd.s32 4294967295, %s1241_s15   ;;  %s1241_s15 = sphi %s1329_s15, %s26_s15   ;;  %s1237_s14 = sphi %s1327_s14, %s1619_s14   ;;  %s1233_s30 = sphi %s1325_s30, %s1618_s30   ;;  %s1229_s29 = sphi %s1323_s29, %s1617_s29   ;;  %s1225_s28 = sphi %s1321_s28, %s1616_s28   ;;  %s1221_s27 = sphi %s1319_s27, %s1615_s27   ;;  %s1217_s26 = sphi %s1317_s26, %s1614_s26   ;;  %s1213_s25 = sphi %s1315_s25, %s1613_s25  }
   0xc   : > { %1585 = sst [smem:[#allocation7_spill]] %s1217_s26  ;;  %s1029_s17 = sadd.s32 4294967294, %s1241_s15  }
   0xd   : > { %1586 = sst [smem:[#allocation8_spill]] %s1221_s27  ;;  %s35_s18 = sadd.s32 1, %s1233_s30 }
   0xe   : > { %1587 = sst [smem:[#allocation9_spill]] %s1229_s29  ;;  %p36_p0 = scmp.ge.s32.totalorder %s35_s18, 4 }
   0xf   : > { %1588 = sst [smem:[#allocation10_spill]] %s1233_s30  ;;  %s38_s19 = sadd.s32 1, %s1237_s14 }
  0x10   : > { %1589 = sst [smem:[#allocation11_spill]] %s1237_s14  ;;  %p378_p1 = scmp.ne.s32.totalorder %s1221_s27, %s1217_s26 }
  0x11   : > { %1590 = sst [smem:[#allocation12_spill]] %s1241_s15  ;;  %p379_p2 = scmp.eq.s32.totalorder %s1028_s16, 7 }
  0x12   : > { %s1621_s18 = smov (%p36_p0, %s35_s18), 0  ;;  %s1623_s19 = smov (!%p36_p0, %s38_s19), %s1237_s14 }
  0x13   : > { %1591 = sst [smem:[#allocation13_spill]] %s1621_s18  ;;  %p1364_p3 = por %p379_p2, %p378_p1 }
  0x14   : > { %p384_p4 = scmp.ne.s32.totalorder %s1217_s26, %s1213_s25  ;;  %p40_p5 = scmp.ge.s32.totalorder %s1623_s19, 2 }
  0x15   : > { %s1592_s20 = scalar_select %p1364_p3, 1, 0 }
  0x16   : > { %p385_p6 = scmp.eq.s32.totalorder %s1029_s17, 7  ;;  %p1032_p7 = scmp.ge.s32.totalorder %s1241_s15, 1 }
  0x17   : > { %1593 = sst [smem:[#allocation14_spill]] %s1592_s20  ;;  %p482_p8 = scmp.lt.s32.totalorder %s1241_s15, 9 }
  0x18   : > { %s1625_s19 = smov (%p40_p5, %s1623_s19), 0  ;;  %p1374_p9 = por %p385_p6, %p384_p4 }
  0x19   : > { %1594 = sst [smem:[#allocation15_spill]] %s1625_s19  ;;  %p483_p10 = pnand %p1032_p7, %p482_p8 }
  0x1a   : > { %s1595_s21 = scalar_select %p1374_p9, 1, 0 }
  0x1b   : > { %s365_s22 = ssub.s32 %s1237_s14, %s1625_s19  ;;  %s368_s23 = sadd.s32 1, %s1221_s27 }
  0x1c   : > { %1596 = sst [smem:[#allocation16_spill]] %s1595_s21  ;;  %p366_p11 = scmp.eq.s32.totalorder %s365_s22, 0 }
  0x1d   : > { %486 = sbr.rel (%p483_p10) target bundleno = 1139 (0x473), region = 72  ;;  %s1567_s16 = sand.u32 (!%p483_p10), 1, %s1217_s26  }
  0x1e   : > { %s1382_s24 = scalar_select %p366_p11, %s1221_s27, %s368_s23  }
  0x1f   : > { %p561_p12 = scmp.lt.s32.totalorder (!%p483_p10), %s1229_s29, 1  ;;  %s1388_s17 = sshll.u32 (!%p483_p10), %s1567_s16, 3 }
  0x20   : > { %1597 = sst [smem:[#allocation17_spill]] %s1382_s24  ;;  %p569_p13 = scmp.lt.s32.totalorder (!%p483_p10), %s1225_s28, 3 }
  0x21   : > { %s1598_s2 = sld [smem:[#allocation18_spill]] (!%p483_p10)  ;;  %s560_s23 = scalar_lea.vmem (!%p483_p10), [#allocation3], %s1388_s17 }
  0x22   : > { %s562_s18 = scalar_select %p561_p12, %s1229_s29, 1 }
  0x23   : > { %s1393_s19 = scalar_select %p569_p13, %s1225_s28, 3 }
  0x24   : > { %s1395_s22 = sshll.u32 %s562_s18, 3  ;;  %p1044_p0 = scmp.ne.s32.totalorder %s1225_s28, 0 }
  0x25   : > { %s1057_s21 = sshll.u32 %s1393_s19, 5  ;;  %s584_s16 = scalar_lea.vmem %s1556_s5, %s1393_s19 }
  0x26   : > { %s581_s14 = scalar_lea.vmem %s1555_s4, %s1057_s21  ;;  %s1423_s24 = scalar_lea.vmem %s1557_s6, %s1057_s21 }
  0x27   : > { %s573_s18 = scalar_lea.vmem %s1598_s2, %s1057_s21  ;;  %s592_s15 = scalar_lea.vmem %s1558_s7, %s1393_s19 }
  0x28   : > { %s1042_s13 = sshll.u32 %s1393_s19, 3  ;;  %s600_s11 = scalar_lea.vmem %s1561_s10, %s1395_s22 }
  0x29   : > { %s1433_s2 = scalar_lea.vmem %s1559_s8, %s1042_s13  ;;  %604 = sbr.rel (%p1044_p0) target bundleno = 48 (0x30), region = 76 }
  0x2e   : > { %vm605_vm0 = vcmask 261120   ;;  %v1243_v0 = vmov 0.0  }
  0x2f   : > { %606 = vst.msk [vmem:[#allocation2] sm:$0xff] %vm605_vm0, %v1243_v0 }
  0x30 PF: > { %v644_v1 = vld [vmem:[%s581_s14 + $0x18] sm:$0xff]  ;;  %v643_v2 = vld [vmem:[%s581_s14 + $0x10] sm:$0xff]  ;;  %v642_v5 = vld [vmem:[%s581_s14 + $0x8] sm:$0xff]  ;;  %s1599_s27 = scalar_lea.vmem %s1552_s1, %s1395_s22  ;;  %vm617_vm1 = vcmask 261120   ;;  %s1600_s25 = scalar_lea.vmem %s1551_s0, %s1395_s22  ;;  %vm700_vm2 = vcmask 64512  }
  0x31   : > { %v612_v3 = vld [vmem:[%s573_s18 + $0x18] sm:$0xff]  ;;  %664 = vmatpush.msra.mxu1 %v644_v1  ;;  %v611_v4 = vld [vmem:[%s573_s18 + $0x10] sm:$0xff]  ;;  %v610_v6 = vld [vmem:[%s573_s18 + $0x8] sm:$0xff]  ;;  %s1601_s12 = scalar_lea.vmem %s1554_s3, %s1393_s19  ;;  %p1052_p1 = scmp.ne.s32.totalorder %s1225_s28, 3 }
  0x32   : > { %633 = vmatpush.msra.mxu0 %v612_v3  ;;  %v641_v7 = vld [vmem:[%s581_s14] sm:$0xff]  ;;  %v675_v17 = vld [vmem:[%s1423_s24 + $0x18] sm:$0xff]  ;;  %v674_v18 = vld [vmem:[%s1423_s24 + $0x10] sm:$0xff]  ;;  %s1602_s22 = sld [smem:[#allocation19_spill]] (!%p1052_p1) }
  0x33   : > { %665 = vmatpush.msra.mxu1 %v643_v2  ;;  %v609_v8 = vld [vmem:[%s573_s18] sm:$0xff]  ;;  %692 = vmatpush.msra.mxu2 %v675_v17  ;;  %v673_v19 = vld [vmem:[%s1423_s24 + $0x8] sm:$0xff]  ;;  %s1604_s21 = sld [smem:[#allocation21_spill]] (!%p1052_p1) }
  0x34   : > { %634 = vmatpush.msra.mxu0 %v611_v4  ;;  %v608_v9 = vld [vmem:[%s1599_s27] sm:$0xff] }
  0x35   : > { %666 = vmatpush.msra.mxu1 %v642_v5  ;;  %v1451_v10 = vld [vmem:[%s1600_s25] sm:$0xff]  ;;  %693 = vmatpush.msra.mxu2 %v674_v18 }
  0x36   : > { %635 = vmatpush.msra.mxu0 %v610_v6  ;;  %v1133_v11 = vld [vmem:[%s584_s16] ss:$0 sm:$0xff] }
  0x37   : > { %667 = vmatpush.msra.mxu1 %v641_v7  ;;  %v1134_v12 = vld [vmem:[%s1601_s12] ss:$0 sm:$0xff]  ;;  %694 = vmatpush.msra.mxu2 %v673_v19 }
  0x38   : > { %636 = vmatpush.msra.mxu0 %v609_v8  ;;  %1046 = vmatmul.msk.f32.vlgmr.msra.gmra.mxu1 %vm617_vm1, %v608_v9  ;;  %v672_v20 = vld [vmem:[%s1423_s24] sm:$0xff] }
  0x39   : > { %1045 = vmatmul.msk.f32.vlgmr.msra.gmra.mxu0 %vm617_vm1, %v1451_v10  ;;  %695 = vmatpush.msra.mxu2 %v672_v20  ;;  %v728_v21 = vld [vmem:[%s600_s11] sm:$0xff] }
  0x3a   : > { %1047 = vmatmul.msk.f32.vlgmr.msra.gmra.mxu2 %vm617_vm1, %v608_v9  ;;  %vm729_vm3 = vcmp.eq.s32.totalorder %v728_v21, 0  ;;  %v1135_v26 = vld [vmem:[%s592_s15] ss:$0 sm:$0xff]  ;;  %s1603_s15 = sld [smem:[#allocation20_spill]] (!%p1052_p1) }
  0x3b   : > { %v766_v34 = vld [vmem:[%s1433_s2] sm:$0xff] }
  0x3c   : > { %785 = vmatpush.msrb.mxu0 %v766_v34  ;;  %v765_v39 = vld [vmem:[#allocation2] sm:$0xff] }
  0xb5   : > { %v669_v13 = vpop.f32.mrf.mxu1 }
  0xb6   : > { %v638_v14 = vpop.f32.mrf.mxu0  ;;  %v670_v15 = vadd.f32 %v1133_v11, %v669_v13 }
  0xb7   : > { %v639_v16 = vadd.f32 %v1134_v12, %v638_v14 }
  0xb8   : > { %1048 = vmatpush.xpose.msk.msra.mxu3 %vm700_vm2, %v670_v15 }
  0xbb   : > { %1049 = vmatmul.msk.f32.vlgmr.msra.gmra.mxu3 %vm700_vm2, %v639_v16 }
  0xbd   : > { %v697_v27 = vpop.f32.mrf.mxu2 }
  0xbe   : > { %v698_v28 = vadd.f32 %v1135_v26, %v697_v27 }
  0xc0   : > { %760 = vmatpush.msrb.mxu3 %v698_v28 }
 0x13e   : > { %v724_v22 = vpop.f32.mrf.mxu3 }
 0x13f   : > { %v727_v23 = vmul.f32 0.35355338, %v724_v22 }
 0x141   : > { %v730_v24 = vsel %vm729_vm3, -1e+12, %v727_v23 }
 0x142   : > { %v731_v25 = vsel %vm700_vm2, %v730_v24, -inf }
 0x143   : > { %732 = vmax.xlane.f32.xlu0 %v731_v25 }
 0x1b6   : > { %v733_v29 = vpop.xlane.xlu0 %732 }
 0x1b7   : > { %v734_v30 = vsub.f32 %v730_v24, %v733_v29 }
 0x1b9   : > { %v735_v31 = vmul.f32 1.442695, %v734_v30 }
 0x1bb   : > { %1136 = vpow2.f32 %v735_v31 }
 0x1c1   : > { %v1137_v32 = vpop.eup %1136 }
 0x1c2   : > { %v737_v33 = vsel %vm700_vm2, %v1137_v32, 0.0 }
 0x1c3   : > { %738 = vadd.xlane.f32.xlu0 %v737_v33 }
 0x236   : > { %v739_v35 = vpop.xlane.xlu0 %738 }
 0x237   : > { %1138 = vrcp.f32 %v739_v35 }
 0x23d   : > { %v1139_v36 = vpop.eup %1138 }
 0x23e   : > { %v741_v37 = vmul.f32 %v1139_v36, %v1137_v32 }
 0x240   : > { %1050 = vmatmul.msk.f32.vlgmr.msrb.gmra.mxu3 %vm700_vm2, %v741_v37 }
 0x2c3   : > { %v762_v38 = vpop.f32.mrf.mxu3 }
 0x2c4   : > { %1051 = vmatmul.msk.f32.vlgmr.msrb.gmra.mxu0 %vm700_vm2, %v762_v38 }
 0x340   : > { %795 = sbr.rel (%p1052_p1) target bundleno = 1117 (0x45d), region = 80 }
 0x341   : > { %v787_v40 = vpop.f32.mrf.mxu0 }
 0x342   : > { %v790_v41 = vadd.f32 %v787_v40, %v765_v39 }
 0x344   : > { %791 = vst.msk [vmem:[#allocation2] sm:$0xff] %vm617_vm1, %v790_v41 }
 0x345   : > { %v1140_v43 = vld [vmem:[%s1602_s22] ss:$0 sm:$0xff]  ;;  %v1244_v46 = vmov 32.0  }
 0x346   : > { %1143 = vrcp.f32 %v1244_v46  ;;  %v1141_v3 = vld [vmem:[%s1603_s15] ss:$0 sm:$0xff] }
 0x347   : > { %v1142_v6 = vld [vmem:[%s1604_s21] ss:$0 sm:$0xff] }
 0x34b   : > { %v796_v42 = vld [vmem:[#allocation2] sm:$0xff] }
 0x34c   : > { %v801_v44 = vadd.f32 %v1140_v43, %v796_v42  ;;  %v1144_v47 = vpop.eup %1143 }
 0x34d   : > { %v806_v48 = vmul.f32 32.0, %v1144_v47  ;;  %vm810_vm4 = vweird.f32 %v1144_v47 }
 0x34e   : > { %v802_v45 = vsel %vm617_vm1, %v801_v44, 0.0 }
 0x34f   : > { %803 = vadd.xlane.f32.xlu0 %v802_v45  ;;  %v807_v49 = vsub.f32 1.0, %v806_v48 }
 0x351   : > { %v808_v50 = vmul.f32 %v1144_v47, %v807_v49 }
 0x353   : > { %v809_v51 = vadd.f32 %v1144_v47, %v808_v50 }
 0x355   : > { %v811_v52 = vsel %vm810_vm4, %v1144_v47, %v809_v51 }
 0x3c2   : > { %v804_v53 = vpop.xlane.xlu0 %803 }
 0x3c3   : > { %v812_v54 = vmul.f32 %v811_v52, %v804_v53 }
 0x3c5   : > { %v813_v55 = vsub.f32 %v801_v44, %v812_v54 }
 0x3c7   : > { %v814_v56 = vmul.f32 %v813_v55, %v813_v55 }
 0x3c9   : > { %v815_v57 = vsel %vm617_vm1, %v814_v56, 0.0 }
 0x3ca   : > { %816 = vadd.xlane.f32.xlu0 %v815_v57 }
 0x43d   : > { %v817_v58 = vpop.xlane.xlu0 %816 }
 0x43e   : > { %v818_v59 = vmul.f32 %v817_v58, %v811_v52 }
 0x440   : > { %v819_v60 = vadd.f32 1e-05, %v818_v59 }
 0x442   : > { %1145 = vrsqrt.f32 %v819_v60  ;;  %vm826_vm6 = vweird.f32 %v819_v60 }
 0x448   : > { %v1146_v61 = vpop.eup %1145 }
 0x449   : > { %v821_v62 = vmul.f32 %v1146_v61, %v819_v60  ;;  %vm827_vm5 = vweird.f32 %v1146_v61 }
 0x44a   : > { %vm828_vm7 = vmor %vm826_vm6, %vm827_vm5 }
 0x44b   : > { %v822_v63 = vmul.f32 %v1146_v61, %v821_v62 }
 0x44d   : > { %v823_v0 = vmul.f32 0.5, %v822_v63 }
 0x44f   : > { %v824_v1 = vsub.f32 1.5, %v823_v0 }
 0x451   : > { %v825_v2 = vmul.f32 %v1146_v61, %v824_v1 }
 0x453   : > { %v829_v4 = vsel %vm828_vm7, %v1146_v61, %v825_v2 }
 0x454   : > { %v830_v5 = vmul.f32 %v829_v4, %v813_v55 }
 0x456   : > { %v835_v7 = vmul.f32 %v1141_v3, %v830_v5 }
 0x458   : > { %v836_v8 = vadd.f32 %v835_v7, %v1451_v10 }
 0x45a   : > { %v841_v9 = vadd.f32 %v1142_v6, %v836_v8 }
 0x45c   : > { %842 = vst.msk [vmem:[%s560_s23] sm:$0xff] %vm617_vm1, %v841_v9 }
 0x45d PF: > { %s1605_s30 = sld [smem:[#allocation9_spill]]  ;;  %s856_s29 = sshll.u32 %s560_s23, 4  ;;  %s857_s29 = int_to_ptr.vmem [resolvable:$true] %s856_s29 }
 0x45e   : > { %s1606_s25 = sld [smem:[#allocation7_spill]] }
 0x45f   : > { %s1608_s12 = sld [smem:[#allocation22_spill]] }
 0x463   : > { %s1054_s14 = sshll.u32 %s1605_s30, 3 }
 0x464   : > { %s1609_s13 = sand.u32 1, %s1606_s25  }
 0x465   : > { %s854_s16 = scalar_lea.hbm %s1608_s12, %s1054_s14  ;;  %s844_s2 = scalar_lea.sflag [#allocation4], %s1609_s13 }
 0x466   : > { %s858_s9 = sshll.u32 %s854_s16, 4  ;;  %s1167_s15 = scalar_lea.hbm %s1608_s12, 16  ;;  %s859_s9 = int_to_ptr.hbm [resolvable:$true] %s858_s9 }
 0x467   : > { %s1161_s19 = sshra.s32 %s859_s9, 4  ;;  %s1162_s19 = int_to_ptr.hbm [resolvable:$true] %s1161_s19 }
 0x468   : > { %s1163_s22 = scalar_lea.hbm %s1162_s19, 8  ;;  %p1168_p6 = scmp.lt.s32.totalorder %s1162_s19, %s1608_s12 }
 0x469   : > { %p1164_p2 = scmp.ne.s32.totalorder %s1162_s19, %s1163_s22  ;;  %p1169_p7 = scmp.lt.s32.totalorder %s1167_s15, %s1163_s22 }
 0x46b   : > { %p1165_p4 = pnand %p1164_p2, %p1364_p3  ;;  %p1170_p8 = por %p1169_p7, %p1168_p6 }
 0x46d   : > { %p1166_p5 = pneg %p1165_p4 }
 0x46f   : > { %p1171_p10 = pnand %p1170_p8, %p1166_p5 }
 0x471   : > { %1174 = shalt.err (!%p1171_p10)
}
 0x472   : > { %1060 = dma.vmem_to_hbm [thread:$0]  (%p1364_p3), %s857_s29, 128, %s859_s9, %s844_s2  }
 0x473 PF: > { %s1610_s17 = sld [smem:[#allocation12_spill]] }
 0x474   : > { %s1611_s23 = sld [smem:[#allocation6_spill]] }
 0x479   : > { %p1066_p11 = scmp.ge.s32.totalorder %s1610_s17, 2 }
 0x47a   : > { %s870_s30 = sand.u32 1, %s1611_s23  }
 0x47b   : > { %p1063_p12 = pnand %p1066_p11, %p1374_p9  ;;  %s871_s25 = scalar_lea.sflag [#allocation4], %s870_s30 }
 0x47d   : > { %p1064_p13 = pneg %p1063_p12 }
 0x47f   : > { %1208 = dma.done.wait (%p1064_p13), %s871_s25, 128  }
 0x480   : > { %1210 = vsyncadd (%p1064_p13), %s871_s25, 4294967168  ;;  %s26_s15 = sadd.s32 1, %s1610_s17   ;;  %s1613_s25 = sld [smem:[#allocation7_spill]] }
 0x481   : > { %p23_p0 = scmp.ge.s32.totalorder %s26_s15, 10   ;;  %s1614_s26 = sld [smem:[#allocation8_spill]] }
 0x482   : > { %s1615_s27 = sld [smem:[#allocation17_spill]] }
 0x483   : > { %s1616_s28 = sld [smem:[#allocation10_spill]]  ;;  %25 = sbr.rel (!%p23_p0) target bundleno = 11 (0xb), region = 142 }
 0x484   : > { %s1617_s29 = sld [smem:[#allocation11_spill]] }
 0x485   : > { %s1618_s30 = sld [smem:[#allocation13_spill]] }
 0x486   : > { %s1619_s14 = sld [smem:[#allocation15_spill]] }
 0x488   :  { %877 = vsyncpa [#allocation4], 1 }
 0x489   :  { %879 = vsyncpa [#allocation4 + $0x1], 1 }

</bundles_post_ra>
